<compile_context>
chip_gen: v7x
topology: tpu7x:2x2x1
jax: 0.10.0
libtpu: 0.0.40
codegen_flags: <defaults>
</compile_context>

<pallas_src>
import functools

import jax
import jax.numpy as jnp
from jax import lax
from jax.experimental import pallas as pl
from jax.experimental.pallas import tpu as pltpu


LN_EPS = 1e-5   # torch.nn.LayerNorm default
LANE = 128
MAX_TB = 512    # batch rows per grid step


# ----------------------------------------------------------------------------
# Kernel
# ----------------------------------------------------------------------------
def _ln_relu(h, gamma, beta):
    """LayerNorm (biased variance, torch semantics) + ReLU, one-pass stats."""
    mu = jnp.mean(h, axis=-1, keepdims=True)
    ms = jnp.mean(h * h, axis=-1, keepdims=True)   # both reductions back-to-back
    var = ms - mu * mu
    h = (h - mu) * lax.rsqrt(var + LN_EPS) * gamma + beta
    return jnp.maximum(h, 0.0)


def _critic_kernel(
    xs_ref, xa_ref,
    w1s_ref, w1a_ref, b1_ref, g1_ref, be1_ref,
    w2_ref, b2_ref, g2_ref, be2_ref,
    w3_ref, b3_ref,
    w4_ref, b4_ref,
    wq_ref, bq_ref,
    q_ref,
):
    # ---- fc1 (concat realized as a split matmul) + LayerNorm + relu ----
    h = (jnp.dot(xs_ref[...], w1s_ref[...], preferred_element_type=jnp.float32)
         + jnp.dot(xa_ref[...], w1a_ref[...], preferred_element_type=jnp.float32)
         + b1_ref[...])
    h = _ln_relu(h, g1_ref[...], be1_ref[...])

    # ---- fc2 + LayerNorm + relu ----
    h = jnp.dot(h, w2_ref[...], preferred_element_type=jnp.float32) + b2_ref[...]
    h = _ln_relu(h, g2_ref[...], be2_ref[...])

    # ---- fc3 + relu (lane-padded to 128; zero lanes stay zero through relu) ----
    h = jnp.maximum(
        jnp.dot(h, w3_ref[...], preferred_element_type=jnp.float32) + b3_ref[...], 0.0)

    # ---- fc4 + relu ----
    h = jnp.maximum(
        jnp.dot(h, w4_ref[...], preferred_element_type=jnp.float32) + b4_ref[...], 0.0)

    # ---- q head: VPU multiply + XLU lane reduction (N=1, skip the MXU) ----
    q_ref[...] = jnp.sum(h * wq_ref[...], axis=-1, keepdims=True) + bq_ref[...]


# ----------------------------------------------------------------------------
# Wrapper
# ----------------------------------------------------------------------------
_PARAM_ORDER = ("w1_s", "w1_a", "b1", "g1", "be1",
                "w2", "b2", "g2", "be2",
                "w3", "b3", "w4", "b4", "wq", "bq")


def _batch_tile(batch):
    # Full batch in one step when small; otherwise 512-row tiles (multiple of 8).
    return batch if batch <= MAX_TB else MAX_TB


def critic_forward(state, action, kparams):
    """Replicates CriticNetwork.forward(state, action) with kernel-prepped params."""
    B = state.shape[0]
    state_dim = state.shape[1] * state.shape[2] * state.shape[3]

    # Contiguous reshapes only — the concat lives inside the kernel.
    state_flat = state.reshape(B, state_dim).astype(jnp.float32)
    action_flat = action.reshape(B, state_dim).astype(jnp.float32)

    param_args = [kparams[k] for k in _PARAM_ORDER]
    args = (state_flat, action_flat, *param_args)

    tb = _batch_tile(B)
    grid = (pl.cdiv(B, tb),)

    x_spec = lambda: pl.BlockSpec((tb, state_dim), lambda i: (i, 0))
    param_specs = [pl.BlockSpec(p.shape, lambda i: (0, 0)) for p in param_args]
    in_specs = [x_spec(), x_spec()] + param_specs
    out_specs = pl.BlockSpec((tb, 1), lambda i: (i, 0))

    # Advisory cost so XLA treats this as the tiny call it is.
    fc1 = kparams["b1"].shape[1]
    fc2 = kparams["b2"].shape[1]
    fc3p = kparams["b3"].shape[1]
    fc4p = kparams["b4"].shape[1]
    flops = 2 * B * (2 * state_dim * fc1 + fc1 * fc2 + fc2 * fc3p + fc3p * fc4p + fc4p)
    flops += B * 10 * (fc1 + fc2)   # LayerNorm / relu elementwise, rough
    weight_bytes = sum(int(p.size) for p in param_args) * 4
    bytes_accessed = weight_bytes + 4 * B * (2 * state_dim + 1)
    cost = pl.CostEstimate(flops=int(flops), transcendentals=int(2 * B),
                           bytes_accessed=int(bytes_accessed))

    return pl.pallas_call(
        _critic_kernel,
        out_shape=jax.ShapeDtypeStruct((B, 1), jnp.float32),
        grid=grid,
        in_specs=in_specs,
        out_specs=out_specs,
        compiler_params=pltpu.CompilerParams(dimension_semantics=("parallel",)),
        cost_estimate=cost,
    )(*args)


# ----------------------------------------------------------------------------
# Parameters (logical, torch-equivalent layout) + kernel-prep transform
# ----------------------------------------------------------------------------
def init_params(key, chw, fc1_dim, fc2_dim, fc3_dim, fc4_dim):
    """Xavier-normal Linear weights, zero biases; LN weight=1, bias=0.

    Weights are stored (in, out) so the forward pass is x @ W; w1 rows follow
    the torch flatten order of cat((state, action), dim=2)."""
    C, H, W = chw
    state_dim = C * H * W
    in_dim = 2 * state_dim

    def xavier(k, fan_in, fan_out):
        std = jnp.sqrt(2.0 / (fan_in + fan_out))
        return jax.random.normal(k, (fan_in, fan_out), dtype=jnp.float32) * std

    ks = jax.random.split(key, 5)
    return {
        "w1": xavier(ks[0], in_dim, fc1_dim),
        "b1": jnp.zeros((1, fc1_dim), jnp.float32),
        "g1": jnp.ones((1, fc1_dim), jnp.float32),
        "be1": jnp.zeros((1, fc1_dim), jnp.float32),
        "w2": xavier(ks[1], fc1_dim, fc2_dim),
        "b2": jnp.zeros((1, fc2_dim), jnp.float32),
        "g2": jnp.ones((1, fc2_dim), jnp.float32),
        "be2": jnp.zeros((1, fc2_dim), jnp.float32),
        "w3": xavier(ks[2], fc2_dim, fc3_dim),
        "b3": jnp.zeros((1, fc3_dim), jnp.float32),
        "w4": xavier(ks[3], fc3_dim, fc4_dim),
        "b4": jnp.zeros((1, fc4_dim), jnp.float32),
        "wq": xavier(ks[4], fc4_dim, 1).T,          # stored as a (1, fc4) row
        "bq": jnp.zeros((1, 1), jnp.float32),
    }


def _round_up(x, m):
    return ((x + m - 1) // m) * m


def prepare_kernel_params(params, chw):
    """Split w1 by the cat(dim=2) interleave and zero-pad fc3/fc4/q to 128 lanes."""
    C, H, W = chw
    HW = H * W
    fc1_dim = params["w1"].shape[1]

    # w1 rows are ordered per channel: [state H*W rows | action H*W rows].
    w1 = params["w1"].reshape(C, 2 * HW, fc1_dim)
    w1_s = w1[:, :HW, :].reshape(C * HW, fc1_dim)
    w1_a = w1[:, HW:, :].reshape(C * HW, fc1_dim)

    fc3 = params["w3"].shape[1]
    fc4 = params["w4"].shape[1]
    fc3p = _round_up(fc3, LANE)
    fc4p = _round_up(fc4, LANE)

    return {
        "w1_s": w1_s, "w1_a": w1_a,
        "b1": params["b1"], "g1": params["g1"], "be1": params["be1"],
        "w2": params["w2"], "b2": params["b2"],
        "g2": params["g2"], "be2": params["be2"],
        # Zero padding keeps results exact: relu(0)=0, padded rows/cols contribute 0.
        "w3": jnp.pad(params["w3"], ((0, 0), (0, fc3p - fc3))),
        "b3": jnp.pad(params["b3"], ((0, 0), (0, fc3p - fc3))),
        "w4": jnp.pad(params["w4"], ((0, fc3p - fc3), (0, fc4p - fc4))),
        "b4": jnp.pad(params["b4"], ((0, 0), (0, fc4p - fc4))),
        "wq": jnp.pad(params["wq"], ((0, 0), (0, fc4p - fc4))),
        "bq": params["bq"],
    }


# ----------------------------------------------------------------------------
# Pure-JAX reference (torch semantics) for correctness checking
# ----------------------------------------------------------------------------
def critic_forward_ref(state, action, params):
    B = state.shape[0]
    action_r = action.reshape(state.shape)
    x = jnp.concatenate((state, action_r), axis=2).reshape(B, -1).astype(jnp.float32)

    def ln(h, g, b):
        mu = jnp.mean(h, axis=-1, keepdims=True)
        var = jnp.mean((h - mu) ** 2, axis=-1, keepdims=True)
        return (h - mu) / jnp.sqrt(var + LN_EPS) * g + b

    h = jax.nn.relu(ln(x @ params["w1"] + params["b1"], params["g1"], params["be1"]))
    h = jax.nn.relu(ln(h @ params["w2"] + params["b2"], params["g2"], params["be2"]))
    h = jax.nn.relu(h @ params["w3"] + params["b3"])
    h = jax.nn.relu(h @ params["w4"] + params["b4"])
    return h @ params["wq"].T + params["bq"]


# ----------------------------------------------------------------------------
if __name__ == "__main__":
    key = jax.random.PRNGKey(0)
    k_state, k_action, k_params = jax.random.split(key, 3)

    # state: (B, C, H, W) = (2, 2, 4, 8)  ->  state_dim = 2*4*8 = 64
    B, C, H, W = 2, 2, 4, 8
    state_dim = C * H * W
    fc1_dim, fc2_dim, fc3_dim, fc4_dim = 64, 64, 32, 32

    state = jax.random.normal(k_state, (B, C, H, W), dtype=jnp.float32)
    action = jax.random.normal(k_action, (B, state_dim), dtype=jnp.float32)

    params = init_params(k_params, (C, H, W), fc1_dim, fc2_dim, fc3_dim, fc4_dim)
    kparams = prepare_kernel_params(params, (C, H, W))   # one-time, off the hot path

    forward = jax.jit(critic_forward)
    q = forward(state, action, kparams)
    q = jax.block_until_ready(q)

    q_ref = critic_forward_ref(state, action, params)
    assert q.shape == (B, 1)
    assert jnp.allclose(q, q_ref, atol=1e-4, rtol=1e-4), (q, q_ref)

    print("KERNEL_OK")
</pallas_src>

<mosaic_0001>
module attributes {stable_mosaic.version = 11 : i64} {
  func.func @_critic_kernel(%arg0: i32, %arg1: memref<2x64xf32, #tpu.memory_space<vmem>>, %arg2: memref<2x64xf32, #tpu.memory_space<vmem>>, %arg3: memref<64x64xf32, #tpu.memory_space<vmem>>, %arg4: memref<64x64xf32, #tpu.memory_space<vmem>>, %arg5: memref<1x64xf32, #tpu.memory_space<vmem>>, %arg6: memref<1x64xf32, #tpu.memory_space<vmem>>, %arg7: memref<1x64xf32, #tpu.memory_space<vmem>>, %arg8: memref<64x64xf32, #tpu.memory_space<vmem>>, %arg9: memref<1x64xf32, #tpu.memory_space<vmem>>, %arg10: memref<1x64xf32, #tpu.memory_space<vmem>>, %arg11: memref<1x64xf32, #tpu.memory_space<vmem>>, %arg12: memref<64x128xf32, #tpu.memory_space<vmem>>, %arg13: memref<1x128xf32, #tpu.memory_space<vmem>>, %arg14: memref<128x128xf32, #tpu.memory_space<vmem>>, %arg15: memref<1x128xf32, #tpu.memory_space<vmem>>, %arg16: memref<1x128xf32, #tpu.memory_space<vmem>>, %arg17: memref<1x1xf32, #tpu.memory_space<vmem>>, %arg18: memref<2x1xf32, #tpu.memory_space<vmem>>) attributes {dimension_semantics = [#tpu.dimension_semantics<parallel>], iteration_bounds = array<i64: 1>, scalar_prefetch = 0 : i64, scratch_operands = 0 : i64, tpu.core_type = #tpu.core_type<tc>, window_params = [{transform_indices = @transform_0, window_bounds = array<i64: 2, 64>}, {transform_indices = @transform_1, window_bounds = array<i64: 2, 64>}, {pipeline_mode = #tpu.pipeline_mode<synchronous>, transform_indices = @transform_2, window_bounds = array<i64: 64, 64>}, {pipeline_mode = #tpu.pipeline_mode<synchronous>, transform_indices = @transform_3, window_bounds = array<i64: 64, 64>}, {pipeline_mode = #tpu.pipeline_mode<synchronous>, transform_indices = @transform_4, window_bounds = array<i64: 1, 64>}, {pipeline_mode = #tpu.pipeline_mode<synchronous>, transform_indices = @transform_5, window_bounds = array<i64: 1, 64>}, {pipeline_mode = #tpu.pipeline_mode<synchronous>, transform_indices = @transform_6, window_bounds = array<i64: 1, 64>}, {pipeline_mode = #tpu.pipeline_mode<synchronous>, transform_indices = @transform_7, window_bounds = array<i64: 64, 64>}, {pipeline_mode = #tpu.pipeline_mode<synchronous>, transform_indices = @transform_8, window_bounds = array<i64: 1, 64>}, {pipeline_mode = #tpu.pipeline_mode<synchronous>, transform_indices = @transform_9, window_bounds = array<i64: 1, 64>}, {pipeline_mode = #tpu.pipeline_mode<synchronous>, transform_indices = @transform_10, window_bounds = array<i64: 1, 64>}, {pipeline_mode = #tpu.pipeline_mode<synchronous>, transform_indices = @transform_11, window_bounds = array<i64: 64, 128>}, {pipeline_mode = #tpu.pipeline_mode<synchronous>, transform_indices = @transform_12, window_bounds = array<i64: 1, 128>}, {pipeline_mode = #tpu.pipeline_mode<synchronous>, transform_indices = @transform_13, window_bounds = array<i64: 128, 128>}, {pipeline_mode = #tpu.pipeline_mode<synchronous>, transform_indices = @transform_14, window_bounds = array<i64: 1, 128>}, {pipeline_mode = #tpu.pipeline_mode<synchronous>, transform_indices = @transform_15, window_bounds = array<i64: 1, 128>}, {pipeline_mode = #tpu.pipeline_mode<synchronous>, transform_indices = @transform_16, window_bounds = array<i64: 1, 1>}, {transform_indices = @transform_17, window_bounds = array<i64: 2, 1>}]} {
    %c0 = arith.constant 0 : index
    %c0_0 = arith.constant 0 : index
    %0 = vector.load %arg1[%c0, %c0_0] : memref<2x64xf32, #tpu.memory_space<vmem>>, vector<2x64xf32>
    %c0_1 = arith.constant 0 : index
    %c0_2 = arith.constant 0 : index
    %1 = vector.load %arg3[%c0_1, %c0_2] : memref<64x64xf32, #tpu.memory_space<vmem>>, vector<64x64xf32>
    %cst = arith.constant dense<0.000000e+00> : vector<2x64xf32>
    %2 = tpu.matmul %0, %1, %cst {dimension_numbers = #tpu.dot_dimension_numbers<[1], [0], [0], [1], [0, 0, 1, 1], [], []>} : vector<2x64xf32>, vector<64x64xf32>, vector<2x64xf32> -> vector<2x64xf32>
    %c0_3 = arith.constant 0 : index
    %c0_4 = arith.constant 0 : index
    %3 = vector.load %arg2[%c0_3, %c0_4] : memref<2x64xf32, #tpu.memory_space<vmem>>, vector<2x64xf32>
    %c0_5 = arith.constant 0 : index
    %c0_6 = arith.constant 0 : index
    %4 = vector.load %arg4[%c0_5, %c0_6] : memref<64x64xf32, #tpu.memory_space<vmem>>, vector<64x64xf32>
    %cst_7 = arith.constant dense<0.000000e+00> : vector<2x64xf32>
    %5 = tpu.matmul %3, %4, %cst_7 {dimension_numbers = #tpu.dot_dimension_numbers<[1], [0], [0], [1], [0, 0, 1, 1], [], []>} : vector<2x64xf32>, vector<64x64xf32>, vector<2x64xf32> -> vector<2x64xf32>
    %6 = arith.addf %2, %5 : vector<2x64xf32>
    %c0_8 = arith.constant 0 : index
    %c0_9 = arith.constant 0 : index
    %7 = vector.load %arg5[%c0_8, %c0_9] : memref<1x64xf32, #tpu.memory_space<vmem>>, vector<1x64xf32>
    %8 = vector.broadcast %7 : vector<1x64xf32> to vector<2x64xf32>
    %9 = arith.addf %6, %8 : vector<2x64xf32>
    %c0_10 = arith.constant 0 : index
    %c0_11 = arith.constant 0 : index
    %10 = vector.load %arg6[%c0_10, %c0_11] : memref<1x64xf32, #tpu.memory_space<vmem>>, vector<1x64xf32>
    %c0_12 = arith.constant 0 : index
    %c0_13 = arith.constant 0 : index
    %11 = vector.load %arg7[%c0_12, %c0_13] : memref<1x64xf32, #tpu.memory_space<vmem>>, vector<1x64xf32>
    %cst_14 = arith.constant dense<0.000000e+00> : vector<2xf32>
    %12 = vector.multi_reduction <add>, %9, %cst_14 [1] : vector<2x64xf32> to vector<2xf32>
    %13 = vector.shape_cast %12 : vector<2xf32> to vector<2x1xf32>
    %cst_15 = arith.constant 6.400000e+01 : f32
    %14 = vector.broadcast %cst_15 : f32 to vector<2x1xf32>
    %15 = arith.divf %13, %14 : vector<2x1xf32>
    %16 = arith.mulf %9, %9 : vector<2x64xf32>
    %cst_16 = arith.constant dense<0.000000e+00> : vector<2xf32>
    %17 = vector.multi_reduction <add>, %16, %cst_16 [1] : vector<2x64xf32> to vector<2xf32>
    %18 = vector.shape_cast %17 : vector<2xf32> to vector<2x1xf32>
    %cst_17 = arith.constant 6.400000e+01 : f32
    %19 = vector.broadcast %cst_17 : f32 to vector<2x1xf32>
    %20 = arith.divf %18, %19 : vector<2x1xf32>
    %21 = arith.mulf %15, %15 : vector<2x1xf32>
    %22 = arith.subf %20, %21 : vector<2x1xf32>
    %23 = vector.broadcast %15 : vector<2x1xf32> to vector<2x64xf32>
    %24 = arith.subf %9, %23 : vector<2x64xf32>
    %cst_18 = arith.constant 9.99999974E-6 : f32
    %25 = vector.broadcast %cst_18 : f32 to vector<2x1xf32>
    %26 = arith.addf %22, %25 : vector<2x1xf32>
    %27 = math.rsqrt %26 : vector<2x1xf32>
    %28 = vector.broadcast %27 : vector<2x1xf32> to vector<2x64xf32>
    %29 = arith.mulf %24, %28 : vector<2x64xf32>
    %30 = vector.broadcast %10 : vector<1x64xf32> to vector<2x64xf32>
    %31 = arith.mulf %29, %30 : vector<2x64xf32>
    %32 = vector.broadcast %11 : vector<1x64xf32> to vector<2x64xf32>
    %33 = arith.addf %31, %32 : vector<2x64xf32>
    %cst_19 = arith.constant 0.000000e+00 : f32
    %34 = vector.broadcast %cst_19 : f32 to vector<2x64xf32>
    %35 = arith.maximumf %33, %34 : vector<2x64xf32>
    %c0_20 = arith.constant 0 : index
    %c0_21 = arith.constant 0 : index
    %36 = vector.load %arg8[%c0_20, %c0_21] : memref<64x64xf32, #tpu.memory_space<vmem>>, vector<64x64xf32>
    %cst_22 = arith.constant dense<0.000000e+00> : vector<2x64xf32>
    %37 = tpu.matmul %35, %36, %cst_22 {dimension_numbers = #tpu.dot_dimension_numbers<[1], [0], [0], [1], [0, 0, 1, 1], [], []>} : vector<2x64xf32>, vector<64x64xf32>, vector<2x64xf32> -> vector<2x64xf32>
    %c0_23 = arith.constant 0 : index
    %c0_24 = arith.constant 0 : index
    %38 = vector.load %arg9[%c0_23, %c0_24] : memref<1x64xf32, #tpu.memory_space<vmem>>, vector<1x64xf32>
    %39 = vector.broadcast %38 : vector<1x64xf32> to vector<2x64xf32>
    %40 = arith.addf %37, %39 : vector<2x64xf32>
    %c0_25 = arith.constant 0 : index
    %c0_26 = arith.constant 0 : index
    %41 = vector.load %arg10[%c0_25, %c0_26] : memref<1x64xf32, #tpu.memory_space<vmem>>, vector<1x64xf32>
    %c0_27 = arith.constant 0 : index
    %c0_28 = arith.constant 0 : index
    %42 = vector.load %arg11[%c0_27, %c0_28] : memref<1x64xf32, #tpu.memory_space<vmem>>, vector<1x64xf32>
    %cst_29 = arith.constant dense<0.000000e+00> : vector<2xf32>
    %43 = vector.multi_reduction <add>, %40, %cst_29 [1] : vector<2x64xf32> to vector<2xf32>
    %44 = vector.shape_cast %43 : vector<2xf32> to vector<2x1xf32>
    %cst_30 = arith.constant 6.400000e+01 : f32
    %45 = vector.broadcast %cst_30 : f32 to vector<2x1xf32>
    %46 = arith.divf %44, %45 : vector<2x1xf32>
    %47 = arith.mulf %40, %40 : vector<2x64xf32>
    %cst_31 = arith.constant dense<0.000000e+00> : vector<2xf32>
    %48 = vector.multi_reduction <add>, %47, %cst_31 [1] : vector<2x64xf32> to vector<2xf32>
    %49 = vector.shape_cast %48 : vector<2xf32> to vector<2x1xf32>
    %cst_32 = arith.constant 6.400000e+01 : f32
    %50 = vector.broadcast %cst_32 : f32 to vector<2x1xf32>
    %51 = arith.divf %49, %50 : vector<2x1xf32>
    %52 = arith.mulf %46, %46 : vector<2x1xf32>
    %53 = arith.subf %51, %52 : vector<2x1xf32>
    %54 = vector.broadcast %46 : vector<2x1xf32> to vector<2x64xf32>
    %55 = arith.subf %40, %54 : vector<2x64xf32>
    %cst_33 = arith.constant 9.99999974E-6 : f32
    %56 = vector.broadcast %cst_33 : f32 to vector<2x1xf32>
    %57 = arith.addf %53, %56 : vector<2x1xf32>
    %58 = math.rsqrt %57 : vector<2x1xf32>
    %59 = vector.broadcast %58 : vector<2x1xf32> to vector<2x64xf32>
    %60 = arith.mulf %55, %59 : vector<2x64xf32>
    %61 = vector.broadcast %41 : vector<1x64xf32> to vector<2x64xf32>
    %62 = arith.mulf %60, %61 : vector<2x64xf32>
    %63 = vector.broadcast %42 : vector<1x64xf32> to vector<2x64xf32>
    %64 = arith.addf %62, %63 : vector<2x64xf32>
    %cst_34 = arith.constant 0.000000e+00 : f32
    %65 = vector.broadcast %cst_34 : f32 to vector<2x64xf32>
    %66 = arith.maximumf %64, %65 : vector<2x64xf32>
    %c0_35 = arith.constant 0 : index
    %c0_36 = arith.constant 0 : index
    %67 = vector.load %arg12[%c0_35, %c0_36] : memref<64x128xf32, #tpu.memory_space<vmem>>, vector<64x128xf32>
    %cst_37 = arith.constant dense<0.000000e+00> : vector<2x128xf32>
    %68 = tpu.matmul %66, %67, %cst_37 {dimension_numbers = #tpu.dot_dimension_numbers<[1], [0], [0], [1], [0, 0, 1, 1], [], []>} : vector<2x64xf32>, vector<64x128xf32>, vector<2x128xf32> -> vector<2x128xf32>
    %c0_38 = arith.constant 0 : index
    %c0_39 = arith.constant 0 : index
    %69 = vector.load %arg13[%c0_38, %c0_39] : memref<1x128xf32, #tpu.memory_space<vmem>>, vector<1x128xf32>
    %70 = vector.broadcast %69 : vector<1x128xf32> to vector<2x128xf32>
    %71 = arith.addf %68, %70 : vector<2x128xf32>
    %cst_40 = arith.constant 0.000000e+00 : f32
    %72 = vector.broadcast %cst_40 : f32 to vector<2x128xf32>
    %73 = arith.maximumf %71, %72 : vector<2x128xf32>
    %c0_41 = arith.constant 0 : index
    %c0_42 = arith.constant 0 : index
    %74 = vector.load %arg14[%c0_41, %c0_42] : memref<128x128xf32, #tpu.memory_space<vmem>>, vector<128x128xf32>
    %cst_43 = arith.constant dense<0.000000e+00> : vector<2x128xf32>
    %75 = tpu.matmul %73, %74, %cst_43 {dimension_numbers = #tpu.dot_dimension_numbers<[1], [0], [0], [1], [0, 0, 1, 1], [], []>} : vector<2x128xf32>, vector<128x128xf32>, vector<2x128xf32> -> vector<2x128xf32>
    %c0_44 = arith.constant 0 : index
    %c0_45 = arith.constant 0 : index
    %76 = vector.load %arg15[%c0_44, %c0_45] : memref<1x128xf32, #tpu.memory_space<vmem>>, vector<1x128xf32>
    %77 = vector.broadcast %76 : vector<1x128xf32> to vector<2x128xf32>
    %78 = arith.addf %75, %77 : vector<2x128xf32>
    %cst_46 = arith.constant 0.000000e+00 : f32
    %79 = vector.broadcast %cst_46 : f32 to vector<2x128xf32>
    %80 = arith.maximumf %78, %79 : vector<2x128xf32>
    %c0_47 = arith.constant 0 : index
    %c0_48 = arith.constant 0 : index
    %81 = vector.load %arg16[%c0_47, %c0_48] : memref<1x128xf32, #tpu.memory_space<vmem>>, vector<1x128xf32>
    %82 = vector.broadcast %81 : vector<1x128xf32> to vector<2x128xf32>
    %83 = arith.mulf %80, %82 : vector<2x128xf32>
    %cst_49 = arith.constant dense<0.000000e+00> : vector<2xf32>
    %84 = vector.multi_reduction <add>, %83, %cst_49 [1] : vector<2x128xf32> to vector<2xf32>
    %85 = vector.shape_cast %84 : vector<2xf32> to vector<2x1xf32>
    %c0_50 = arith.constant 0 : index
    %c0_51 = arith.constant 0 : index
    %86 = vector.load %arg17[%c0_50, %c0_51] : memref<1x1xf32, #tpu.memory_space<vmem>>, vector<1x1xf32>
    %87 = vector.broadcast %86 : vector<1x1xf32> to vector<2x1xf32>
    %88 = arith.addf %85, %87 : vector<2x1xf32>
    %c0_52 = arith.constant 0 : index
    %c0_53 = arith.constant 0 : index
    %89 = vector.load %arg18[%c0_52, %c0_53] : memref<2x1xf32, #tpu.memory_space<vmem>>, vector<2x1xf32>
    tpu.vector_store %arg18[%c0_52, %c0_53], %88 {strides = array<i32>} : memref<2x1xf32, #tpu.memory_space<vmem>>, vector<2x1xf32>,
    return
  }
  func.func @transform_0(%arg0: i32) -> (i32, i32) {
    %c0_i32 = arith.constant 0 : i32
    %c0_i32_0 = arith.constant 0 : i32
    return %arg0, %c0_i32 : i32, i32
  }
  func.func @transform_1(%arg0: i32) -> (i32, i32) {
    %c0_i32 = arith.constant 0 : i32
    %c0_i32_0 = arith.constant 0 : i32
    return %arg0, %c0_i32 : i32, i32
  }
  func.func @transform_2(%arg0: i32) -> (i32, i32) {
    %c0_i32 = arith.constant 0 : i32
    %c0_i32_0 = arith.constant 0 : i32
    %c0_i32_1 = arith.constant 0 : i32
    return %c0_i32, %c0_i32_0 : i32, i32
  }
  func.func @transform_3(%arg0: i32) -> (i32, i32) {
    %c0_i32 = arith.constant 0 : i32
    %c0_i32_0 = arith.constant 0 : i32
    %c0_i32_1 = arith.constant 0 : i32
    return %c0_i32, %c0_i32_0 : i32, i32
  }
  func.func @transform_4(%arg0: i32) -> (i32, i32) {
    %c0_i32 = arith.constant 0 : i32
    %c0_i32_0 = arith.constant 0 : i32
    %c0_i32_1 = arith.constant 0 : i32
    return %c0_i32, %c0_i32_0 : i32, i32
  }
  func.func @transform_5(%arg0: i32) -> (i32, i32) {
    %c0_i32 = arith.constant 0 : i32
    %c0_i32_0 = arith.constant 0 : i32
    %c0_i32_1 = arith.constant 0 : i32
    return %c0_i32, %c0_i32_0 : i32, i32
  }
  func.func @transform_6(%arg0: i32) -> (i32, i32) {
    %c0_i32 = arith.constant 0 : i32
    %c0_i32_0 = arith.constant 0 : i32
    %c0_i32_1 = arith.constant 0 : i32
    return %c0_i32, %c0_i32_0 : i32, i32
  }
  func.func @transform_7(%arg0: i32) -> (i32, i32) {
    %c0_i32 = arith.constant 0 : i32
    %c0_i32_0 = arith.constant 0 : i32
    %c0_i32_1 = arith.constant 0 : i32
    return %c0_i32, %c0_i32_0 : i32, i32
  }
  func.func @transform_8(%arg0: i32) -> (i32, i32) {
    %c0_i32 = arith.constant 0 : i32
    %c0_i32_0 = arith.constant 0 : i32
    %c0_i32_1 = arith.constant 0 : i32
    return %c0_i32, %c0_i32_0 : i32, i32
  }
  func.func @transform_9(%arg0: i32) -> (i32, i32) {
    %c0_i32 = arith.constant 0 : i32
    %c0_i32_0 = arith.constant 0 : i32
    %c0_i32_1 = arith.constant 0 : i32
    return %c0_i32, %c0_i32_0 : i32, i32
  }
  func.func @transform_10(%arg0: i32) -> (i32, i32) {
    %c0_i32 = arith.constant 0 : i32
    %c0_i32_0 = arith.constant 0 : i32
    %c0_i32_1 = arith.constant 0 : i32
    return %c0_i32, %c0_i32_0 : i32, i32
  }
  func.func @transform_11(%arg0: i32) -> (i32, i32) {
    %c0_i32 = arith.constant 0 : i32
    %c0_i32_0 = arith.constant 0 : i32
    %c0_i32_1 = arith.constant 0 : i32
    return %c0_i32, %c0_i32_0 : i32, i32
  }
  func.func @transform_12(%arg0: i32) -> (i32, i32) {
    %c0_i32 = arith.constant 0 : i32
    %c0_i32_0 = arith.constant 0 : i32
    %c0_i32_1 = arith.constant 0 : i32
    return %c0_i32, %c0_i32_0 : i32, i32
  }
  func.func @transform_13(%arg0: i32) -> (i32, i32) {
    %c0_i32 = arith.constant 0 : i32
    %c0_i32_0 = arith.constant 0 : i32
    %c0_i32_1 = arith.constant 0 : i32
    return %c0_i32, %c0_i32_0 : i32, i32
  }
  func.func @transform_14(%arg0: i32) -> (i32, i32) {
    %c0_i32 = arith.constant 0 : i32
    %c0_i32_0 = arith.constant 0 : i32
    %c0_i32_1 = arith.constant 0 : i32
    return %c0_i32, %c0_i32_0 : i32, i32
  }
  func.func @transform_15(%arg0: i32) -> (i32, i32) {
    %c0_i32 = arith.constant 0 : i32
    %c0_i32_0 = arith.constant 0 : i32
    %c0_i32_1 = arith.constant 0 : i32
    return %c0_i32, %c0_i32_0 : i32, i32
  }
  func.func @transform_16(%arg0: i32) -> (i32, i32) {
    %c0_i32 = arith.constant 0 : i32
    %c0_i32_0 = arith.constant 0 : i32
    %c0_i32_1 = arith.constant 0 : i32
    return %c0_i32, %c0_i32_0 : i32, i32
  }
  func.func @transform_17(%arg0: i32) -> (i32, i32) {
    %c0_i32 = arith.constant 0 : i32
    %c0_i32_0 = arith.constant 0 : i32
    return %arg0, %c0_i32 : i32, i32
  }
}

</mosaic_0001>

<bundles_post_ra>
// kernel: critic_forward.1
= control target key start
LH: loop header
LB: loop body
LE: loop exit
PB: predicated region body
PF: predicated region fallthrough
CT: control target
= control target key end

     0   :  { %s1621_s0 = inlined_call_operand.vmem [shape: f32[2,64], index: 0, kind: input, shape index: {}]   ;;  %s1622_s1 = inlined_call_operand.vmem [shape: f32[2,64], index: 1, kind: input, shape index: {}]   ;;  %s1623_s2 = inlined_call_operand.hbm [shape: f32[64,64], index: 2, kind: input, shape index: {}]   ;;  %s1624_s3 = inlined_call_operand.hbm [shape: f32[64,64], index: 3, kind: input, shape index: {}]   ;;  %s1625_s4 = inlined_call_operand.vmem [shape: f32[1,64], index: 4, kind: input, shape index: {}]   ;;  %s1626_s5 = inlined_call_operand.hbm [shape: f32[1,64], index: 5, kind: input, shape index: {}]   ;;  %s1627_s6 = inlined_call_operand.hbm [shape: f32[1,64], index: 6, kind: input, shape index: {}]   ;;  %s1628_s7 = inlined_call_operand.vmem [shape: f32[64,64], index: 7, kind: input, shape index: {}]   ;;  %s1629_s8 = inlined_call_operand.hbm [shape: f32[1,64], index: 8, kind: input, shape index: {}]   ;;  %s1630_s9 = inlined_call_operand.hbm [shape: f32[1,64], index: 9, kind: input, shape index: {}]   ;;  %s1631_s10 = inlined_call_operand.hbm [shape: f32[1,64], index: 10, kind: input, shape index: {}]   ;;  %s1632_s11 = inlined_call_operand.hbm [shape: f32[64,128], index: 11, kind: input, shape index: {}]   ;;  %s1633_s12 = inlined_call_operand.hbm [shape: f32[1,128], index: 12, kind: input, shape index: {}]   ;;  %s1634_s13 = inlined_call_operand.hbm [shape: f32[128,128], index: 13, kind: input, shape index: {}]   ;;  %s1635_s14 = inlined_call_operand.hbm [shape: f32[1,128], index: 14, kind: input, shape index: {}]   ;;  %s1636_s15 = inlined_call_operand.vmem [shape: f32[1,128], index: 15, kind: input, shape index: {}]   ;;  %s1637_s16 = inlined_call_operand.<no memory space> [shape: f32[1,1], index: 16, kind: input, shape index: {}]   ;;  %s1638_s17 = inlined_call_operand.vmem [shape: f32[2,1], index: 17, kind: output, shape index: {}]  }
   0x1   :  { %1639 = sst [smem:[#allocation26_spill]] %s1621_s0  ;;  %v22_v0 = vstv %s1637_s16 }
   0x2   :  { %1640 = sst [smem:[#allocation27_spill]] %s1622_s1  ;;  %23 = vst [vmem:[#allocation2] sm:$0x1] %v22_v0 }
   0x3   :  { %24 = vsyncpa [#allocation4], 0 }
   0x4   :  { %25 = vsyncpa [#allocation6], 0 }
   0x5   :  { %26 = vsyncpa [#allocation9], 0 }
   0x6   :  { %27 = vsyncpa [#allocation12], 0 }
   0x7   :  { %28 = vsyncpa [#allocation15], 0 }
   0x8   :  { %29 = vsyncpa [#allocation18], 0  ;;  %s1259_s26 = smov [#allocation5]   ;;  %s1260_s28 = smov [#allocation8]  }
   0x9   :  { %s51_s27 = sshll.u32 %s1259_s26, 4  ;;  %s76_s29 = sshll.u32 %s1260_s28, 4  ;;  %s52_s27 = int_to_ptr.vmem [resolvable:$true] %s51_s27  ;;  %s1368_s29 = int_to_ptr.vmem [resolvable:$true] %s76_s29 }
   0xa   :  { %s1005_s18 = scalar_lea.hbm %s1624_s3, 1024 }
   0xb   :  { %p1006_p0 = scmp.ne.s32.totalorder %s1624_s3, %s1005_s18  ;;  %p1009_p1 = scmp.lt.u32.totalorder %s1005_s18, %s1624_s3 }
   0xd   :  { %p1011_p2 = pnand %p1009_p1, %p1006_p0 }
   0xf   :  { %1014 = shalt.err (!%p1011_p2)
}
  0x10   :  { %s1015_s21 = scalar_lea.vmem %s52_s27, 1024  ;;  %p1020_p4 = scmp.lt.s32.totalorder %s52_s27, %s52_s27 }
  0x11   :  { %p1016_p3 = scmp.ne.s32.totalorder %s52_s27, %s1015_s21  ;;  %p1021_p5 = scmp.lt.s32.totalorder %s1015_s21, %s1015_s21 }
  0x13   :  { %p1022_p6 = por %p1021_p5, %p1020_p4 }
  0x15   :  { %p1023_p7 = pnand %p1022_p6, %p1016_p3 }
  0x17   :  { %1026 = shalt.err (!%p1023_p7)
}
  0x18   :  { %s1261_s22 = smov 128   ;;  %s1262_s23 = smov 8  }
  0x19   :  { %57 = dma.hbm_to_vmem [thread:$0]  %s1624_s3, 1024, %s52_s27, [#allocation6], %s1261_s22, %s1261_s22, %s1262_s23  }
  0x1a   :  { %s1027_s0 = scalar_lea.hbm %s1627_s6, 16 }
  0x1b   :  { %p1028_p8 = scmp.ne.s32.totalorder %s1627_s6, %s1027_s0  ;;  %p1031_p9 = scmp.lt.u32.totalorder %s1027_s0, %s1627_s6 }
  0x1d   :  { %p1033_p10 = pnand %p1031_p9, %p1028_p8 }
  0x1f   :  { %1036 = shalt.err (!%p1033_p10)
}
  0x20   :  { %s1037_s1 = scalar_lea.vmem %s1368_s29, 16  ;;  %s1041_s3 = scalar_lea.vmem %s1368_s29, 32 }
  0x21   :  { %p1038_p11 = scmp.ne.s32.totalorder %s1368_s29, %s1037_s1  ;;  %p1042_p12 = scmp.lt.s32.totalorder %s1368_s29, %s1368_s29 }
  0x22   :  { %p1043_p13 = scmp.lt.s32.totalorder %s1041_s3, %s1037_s1 }
  0x24   :  { %p1044_p0 = por %p1043_p13, %p1042_p12 }
  0x26   :  { %p1045_p1 = pnand %p1044_p0, %p1038_p11 }
  0x28   :  { %1048 = shalt.err (!%p1045_p1)
}
  0x29   :  { %79 = dma.hbm_to_vmem [thread:$0]  %s1627_s6, 16, %s1368_s29, [#allocation9]  }
  0x2a   :  { %s1263_s21 = smov [#allocation11]   ;;  %s1264_s25 = smov [#allocation14]  }
  0x2b   :  { %s98_s24 = sshll.u32 %s1263_s21, 4  ;;  %s117_s26 = sshll.u32 %s1264_s25, 4  ;;  %s99_s24 = int_to_ptr.vmem [resolvable:$true] %s98_s24  ;;  %s1403_s26 = int_to_ptr.vmem [resolvable:$true] %s117_s26 }
  0x2c   :  { %s1049_s30 = scalar_lea.hbm %s1630_s9, 16 }
  0x2d   :  { %p1050_p2 = scmp.ne.s32.totalorder %s1630_s9, %s1049_s30  ;;  %p1053_p3 = scmp.lt.u32.totalorder %s1049_s30, %s1630_s9 }
  0x2f   :  { %p1055_p4 = pnand %p1053_p3, %p1050_p2 }
  0x31   :  { %1058 = shalt.err (!%p1055_p4)
}
  0x32   :  { %s1059_s6 = scalar_lea.vmem %s99_s24, 16  ;;  %s1063_s29 = scalar_lea.vmem %s99_s24, 32 }
  0x33   :  { %p1060_p5 = scmp.ne.s32.totalorder %s99_s24, %s1059_s6  ;;  %p1064_p6 = scmp.lt.s32.totalorder %s99_s24, %s99_s24 }
  0x34   :  { %p1065_p7 = scmp.lt.s32.totalorder %s1063_s29, %s1059_s6 }
  0x36   :  { %p1066_p8 = por %p1065_p7, %p1064_p6 }
  0x38   :  { %p1067_p9 = pnand %p1066_p8, %p1060_p5 }
  0x3a   :  { %1070 = shalt.err (!%p1067_p9)
}
  0x3b   :  { %101 = dma.hbm_to_vmem [thread:$0]  %s1630_s9, 16, %s99_s24, [#allocation12]  }
  0x3c   :  { %s1071_s25 = scalar_lea.hbm %s1632_s11, 1024 }
  0x3d   :  { %p1072_p10 = scmp.ne.s32.totalorder %s1632_s11, %s1071_s25  ;;  %p1075_p11 = scmp.lt.u32.totalorder %s1071_s25, %s1632_s11 }
  0x3f   :  { %p1077_p12 = pnand %p1075_p11, %p1072_p10 }
  0x41   :  { %1080 = shalt.err (!%p1077_p12)
}
  0x42   :  { %s1081_s19 = scalar_lea.vmem %s1403_s26, 1024  ;;  %p1086_p0 = scmp.lt.s32.totalorder %s1403_s26, %s1403_s26 }
  0x43   :  { %p1082_p13 = scmp.ne.s32.totalorder %s1403_s26, %s1081_s19  ;;  %p1087_p1 = scmp.lt.s32.totalorder %s1081_s19, %s1081_s19 }
  0x45   :  { %p1088_p2 = por %p1087_p1, %p1086_p0 }
  0x47   :  { %p1089_p3 = pnand %p1088_p2, %p1082_p13 }
  0x49   :  { %1092 = shalt.err (!%p1089_p3)
}
  0x4a   :  { %123 = dma.hbm_to_vmem [thread:$0]  %s1632_s11, 1024, %s1403_s26, [#allocation15], %s1261_s22, %s1261_s22, %s1262_s23  }
  0x4b   :  { %s1265_s16 = smov [#allocation17]   ;;  %s1266_s6 = smov [#allocation3]  }
  0x4c   :  { %s139_s1 = sshll.u32 %s1265_s16, 4  ;;  %s39_s29 = sshll.u32 %s1266_s6, 4  ;;  %s140_s1 = int_to_ptr.vmem [resolvable:$true] %s139_s1  ;;  %s1437_s29 = int_to_ptr.vmem [resolvable:$true] %s39_s29 }
  0x4d   :  { %s1093_s20 = scalar_lea.hbm %s1634_s13, 2048 }
  0x4e   :  { %p1094_p4 = scmp.ne.s32.totalorder %s1634_s13, %s1093_s20  ;;  %p1097_p5 = scmp.lt.u32.totalorder %s1093_s20, %s1634_s13 }
  0x50   :  { %p1099_p6 = pnand %p1097_p5, %p1094_p4 }
  0x52   :  { %1102 = shalt.err (!%p1099_p6)
}
  0x53   :  { %s1103_s11 = scalar_lea.vmem %s140_s1, 2048  ;;  %p1108_p8 = scmp.lt.s32.totalorder %s140_s1, %s140_s1 }
  0x54   :  { %p1104_p7 = scmp.ne.s32.totalorder %s140_s1, %s1103_s11  ;;  %p1109_p9 = scmp.lt.s32.totalorder %s1103_s11, %s1103_s11 }
  0x56   :  { %p1110_p10 = por %p1109_p9, %p1108_p8 }
  0x58   :  { %p1111_p11 = pnand %p1110_p10, %p1104_p7 }
  0x5a   :  { %1114 = shalt.err (!%p1111_p11)
}
  0x5b   :  { %145 = dma.hbm_to_vmem [thread:$0]  %s1634_s13, 2048, %s140_s1, [#allocation18], %s1261_s22, %s1261_s22, %s1262_s23  }
  0x5c   :  { %s1115_s9 = scalar_lea.hbm %s1623_s2, 1024 }
  0x5d   :  { %p1116_p12 = scmp.ne.s32.totalorder %s1623_s2, %s1115_s9  ;;  %p1119_p13 = scmp.lt.u32.totalorder %s1115_s9, %s1623_s2 }
  0x5f   :  { %p1121_p0 = pnand %p1119_p13, %p1116_p12 }
  0x61   :  { %1124 = shalt.err (!%p1121_p0)
}
  0x62   :  { %s1125_s27 = scalar_lea.vmem %s1437_s29, 1024  ;;  %p1130_p2 = scmp.lt.s32.totalorder %s1437_s29, %s1437_s29 }
  0x63   :  { %p1126_p1 = scmp.ne.s32.totalorder %s1437_s29, %s1125_s27  ;;  %p1131_p3 = scmp.lt.s32.totalorder %s1125_s27, %s1125_s27 }
  0x65   :  { %p1132_p4 = por %p1131_p3, %p1130_p2 }
  0x67   :  { %p1133_p5 = pnand %p1132_p4, %p1126_p1 }
  0x69   :  { %1136 = shalt.err (!%p1133_p5)
}
  0x6a   :  { %45 = dma.hbm_to_vmem [thread:$0]  %s1623_s2, 1024, %s1437_s29, [#allocation4], %s1261_s22, %s1261_s22, %s1262_s23  }
  0x6b   :  { %s1267_s20 = smov [#allocation7]   ;;  %s1268_s25 = smov [#allocation10]  }
  0x6c   :  { %s66_s21 = sshll.u32 %s1267_s20, 4  ;;  %s88_s28 = sshll.u32 %s1268_s25, 4  ;;  %s67_s21 = int_to_ptr.vmem [resolvable:$true] %s66_s21  ;;  %s89_s28 = int_to_ptr.vmem [resolvable:$true] %s88_s28 }
  0x6d   :  { %s1137_s26 = scalar_lea.hbm %s1626_s5, 16 }
  0x6e   :  { %p1138_p6 = scmp.ne.s32.totalorder %s1626_s5, %s1137_s26  ;;  %p1141_p7 = scmp.lt.u32.totalorder %s1137_s26, %s1626_s5 }
  0x70   :  { %p1143_p8 = pnand %p1141_p7, %p1138_p6 }
  0x72   :  { %1146 = shalt.err (!%p1143_p8)
}
  0x73   :  { %s1147_s2 = scalar_lea.vmem %s67_s21, 16  ;;  %s1151_s22 = scalar_lea.vmem %s67_s21, 32 }
  0x74   :  { %p1148_p9 = scmp.ne.s32.totalorder %s67_s21, %s1147_s2  ;;  %p1152_p10 = scmp.lt.s32.totalorder %s67_s21, %s67_s21 }
  0x75   :  { %p1153_p11 = scmp.lt.s32.totalorder %s1151_s22, %s1147_s2 }
  0x77   :  { %p1154_p12 = por %p1153_p11, %p1152_p10 }
  0x79   :  { %p1155_p13 = pnand %p1154_p12, %p1148_p9 }
  0x7b   :  { %1158 = shalt.err (!%p1155_p13)
}
  0x7c   :  { %69 = dma.hbm_to_vmem [thread:$0]  %s1626_s5, 16, %s67_s21, [#allocation6]  }
  0x7d   :  { %s1159_s6 = scalar_lea.hbm %s1629_s8, 16 }
  0x7e   :  { %p1160_p0 = scmp.ne.s32.totalorder %s1629_s8, %s1159_s6  ;;  %p1163_p1 = scmp.lt.u32.totalorder %s1159_s6, %s1629_s8 }
  0x80   :  { %p1165_p2 = pnand %p1163_p1, %p1160_p0 }
  0x82   :  { %1168 = shalt.err (!%p1165_p2)
}
  0x83   :  { %s1169_s20 = scalar_lea.vmem %s89_s28, 16  ;;  %s1173_s25 = scalar_lea.vmem %s89_s28, 32 }
  0x84   :  { %p1170_p3 = scmp.ne.s32.totalorder %s89_s28, %s1169_s20  ;;  %p1174_p4 = scmp.lt.s32.totalorder %s89_s28, %s89_s28 }
  0x85   :  { %p1175_p5 = scmp.lt.s32.totalorder %s1173_s25, %s1169_s20 }
  0x87   :  { %p1176_p6 = por %p1175_p5, %p1174_p4 }
  0x89   :  { %p1177_p7 = pnand %p1176_p6, %p1170_p3 }
  0x8b   :  { %1180 = shalt.err (!%p1177_p7)
}
  0x8c   :  { %91 = dma.hbm_to_vmem [thread:$0]  %s1629_s8, 16, %s89_s28, [#allocation9]  }
  0x8d   :  { %s1269_s0 = smov [#allocation13]   ;;  %s1270_s26 = smov [#allocation16]  }
  0x8e   :  { %s108_s11 = sshll.u32 %s1269_s0, 4  ;;  %s130_s30 = sshll.u32 %s1270_s26, 4  ;;  %s109_s11 = int_to_ptr.vmem [resolvable:$true] %s108_s11  ;;  %s131_s30 = int_to_ptr.vmem [resolvable:$true] %s130_s30 }
  0x8f   :  { %s1181_s9 = scalar_lea.hbm %s1631_s10, 16 }
  0x90   :  { %p1182_p8 = scmp.ne.s32.totalorder %s1631_s10, %s1181_s9  ;;  %p1185_p9 = scmp.lt.u32.totalorder %s1181_s9, %s1631_s10 }
  0x92   :  { %p1187_p10 = pnand %p1185_p9, %p1182_p8 }
  0x94   :  { %1190 = shalt.err (!%p1187_p10)
}
  0x95   :  { %s1191_s8 = scalar_lea.vmem %s109_s11, 16  ;;  %s1195_s28 = scalar_lea.vmem %s109_s11, 32 }
  0x96   :  { %p1192_p11 = scmp.ne.s32.totalorder %s109_s11, %s1191_s8  ;;  %p1196_p12 = scmp.lt.s32.totalorder %s109_s11, %s109_s11 }
  0x97   :  { %p1197_p13 = scmp.lt.s32.totalorder %s1195_s28, %s1191_s8 }
  0x99   :  { %p1198_p0 = por %p1197_p13, %p1196_p12 }
  0x9b   :  { %p1199_p1 = pnand %p1198_p0, %p1192_p11 }
  0x9d   :  { %1202 = shalt.err (!%p1199_p1)
}
  0x9e   :  { %111 = dma.hbm_to_vmem [thread:$0]  %s1631_s10, 16, %s109_s11, [#allocation12]  }
  0x9f   :  { %s1203_s27 = scalar_lea.hbm %s1633_s12, 16 }
  0xa0   :  { %p1204_p2 = scmp.ne.s32.totalorder %s1633_s12, %s1203_s27  ;;  %p1207_p3 = scmp.lt.u32.totalorder %s1203_s27, %s1633_s12 }
  0xa2   :  { %p1209_p4 = pnand %p1207_p3, %p1204_p2 }
  0xa4   :  { %1212 = shalt.err (!%p1209_p4)
}
  0xa5   :  { %s1213_s5 = scalar_lea.vmem %s131_s30, 16  ;;  %s1217_s21 = scalar_lea.vmem %s131_s30, 32 }
  0xa6   :  { %p1214_p5 = scmp.ne.s32.totalorder %s131_s30, %s1213_s5  ;;  %p1218_p6 = scmp.lt.s32.totalorder %s131_s30, %s131_s30 }
  0xa7   :  { %p1219_p7 = scmp.lt.s32.totalorder %s1217_s21, %s1213_s5 }
  0xa9   :  { %p1220_p8 = por %p1219_p7, %p1218_p6 }
  0xab   :  { %p1221_p9 = pnand %p1220_p8, %p1214_p5 }
  0xad   :  { %1224 = shalt.err (!%p1221_p9)
}
  0xae   :  { %133 = dma.hbm_to_vmem [thread:$0]  %s1633_s12, 16, %s131_s30, [#allocation15]  }
  0xaf   :  { %s1271_s11 = smov [#allocation19]   ;;  %s1225_s9 = scalar_lea.hbm %s1635_s14, 16 }
  0xb0   :  { %s152_s26 = sshll.u32 %s1271_s11, 4  ;;  %p1226_p10 = scmp.ne.s32.totalorder %s1635_s14, %s1225_s9  ;;  %s153_s26 = int_to_ptr.vmem [resolvable:$true] %s152_s26 }
  0xb1   :  { %p1229_p11 = scmp.lt.u32.totalorder %s1225_s9, %s1635_s14 }
  0xb3   :  { %p1231_p12 = pnand %p1229_p11, %p1226_p10 }
  0xb5   :  { %1234 = shalt.err (!%p1231_p12)
}
  0xb6   :  { %s1235_s8 = scalar_lea.vmem %s153_s26, 16  ;;  %s1239_s12 = scalar_lea.vmem %s153_s26, 32 }
  0xb7   :  { %p1236_p13 = scmp.ne.s32.totalorder %s153_s26, %s1235_s8  ;;  %p1240_p0 = scmp.lt.s32.totalorder %s153_s26, %s153_s26 }
  0xb8   :  { %p1241_p1 = scmp.lt.s32.totalorder %s1239_s12, %s1235_s8 }
  0xba   :  { %p1242_p2 = por %p1241_p1, %p1240_p0 }
  0xbc   :  { %p1243_p3 = pnand %p1242_p2, %p1236_p13 }
  0xbe   :  { %1246 = shalt.err (!%p1243_p3)
}
  0xbf   :  { %155 = dma.hbm_to_vmem [thread:$0]  %s1635_s14, 16, %s153_s26, [#allocation18]  }
  0xc0   :  { %1247 = dma.done.wait [#allocation4], 1024  }
  0xc1   :  { %1248 = vsyncadd [#allocation4], 4294966272 }
  0xc2   :  { %1249 = dma.done.wait [#allocation6], 1040  }
  0xc3   :  { %1250 = vsyncadd [#allocation6], 4294966256 }
  0xc4   :  { %1251 = dma.done.wait [#allocation9], 32  }
  0xc5   :  { %1252 = vsyncadd [#allocation9], 4294967264 }
  0xc6   :  { %1253 = dma.done.wait [#allocation12], 32  }
  0xc7   :  { %1254 = vsyncadd [#allocation12], 4294967264 }
  0xc8   :  { %1255 = dma.done.wait [#allocation15], 1040  }
  0xc9   :  { %1256 = vsyncadd [#allocation15], 4294966256 }
  0xca   :  { %1257 = dma.done.wait [#allocation18], 2064  }
  0xcb   :  { %1258 = vsyncadd [#allocation18], 4294965232  ;;  %v1272_v1 = vmov 0.0|0.0   ;;  %vm1273_vm0 = vmmov 0   ;;  %v1274_v2 = vmov 0.0   ;;  %v203_v3 = vld [vmem:[#allocation5] sm:$0xff] }
  0xcc   :  { %913 = vmatprep.subr.bf16.mxu1 %v1272_v1  ;;  %818 = vmatprep.mubr.msk.f32.mxu1 %vm1273_vm0, %v1274_v2  ;;  %v204_v4 = vld [vmem:[#allocation5 + $0x8] sm:$0xff]  ;;  %v205_v5 = vld [vmem:[#allocation5 + $0x10] sm:$0xff]  ;;  %v206_v7 = vld [vmem:[#allocation5 + $0x18] sm:$0xff]  ;;  %s1641_s16 = sld [smem:[#allocation27_spill]]  ;;  %vm211_vm1 = vcmask 523264   ;;  %s1642_s27 = sld [smem:[#allocation26_spill]] }
  0xcd   :  { %937 = vmatprep.subr.bf16.mxu0 %v1272_v1  ;;  %856 = vmatprep.mubr.msk.f32.mxu0 %vm1273_vm0, %v1274_v2  ;;  %v914_v6 = vpack.c.bf16 %v204_v4, %v203_v3  ;;  %v917_v8 = vpack.c.bf16 %v206_v7, %v205_v5  ;;  %v207_v9 = vld [vmem:[#allocation5 + $0x20] sm:$0xff]  ;;  %v208_v10 = vld [vmem:[#allocation5 + $0x28] sm:$0xff]  ;;  %v209_v12 = vld [vmem:[#allocation5 + $0x30] sm:$0xff]  ;;  %vm368_vm2 = vcmask 517120   ;;  %vm711_vm3 = vcmask 1041408  }
  0xce   :  { %v920_v11 = vpack.c.bf16 %v208_v10, %v207_v9  ;;  %v210_v13 = vld [vmem:[#allocation5 + $0x38] sm:$0xff]  ;;  %v194_v15 = vld [vmem:[#allocation3] sm:$0xff]  ;;  %v195_v16 = vld [vmem:[#allocation3 + $0x8] sm:$0xff]  ;;  %vm723_vm4 = vcmask 1024  }
  0xcf   :  { %915 = vmatpush3.bf16.msra.mxu1 %v914_v6  ;;  %v923_v14 = vpack.c.bf16 %v210_v13, %v209_v12  ;;  %v926_v18 = vpack.c.bf16 %v195_v16, %v194_v15  ;;  %v196_v19 = vld [vmem:[#allocation3 + $0x10] sm:$0xff]  ;;  %v197_v20 = vld [vmem:[#allocation3 + $0x18] sm:$0xff]  ;;  %v198_v22 = vld [vmem:[#allocation3 + $0x20] sm:$0xff] }
  0xd0   :  { %916 = vmatprep.subr.bf16.mxu1 %v1272_v1  ;;  %v929_v21 = vpack.c.bf16 %v197_v20, %v196_v19  ;;  %v199_v23 = vld [vmem:[#allocation3 + $0x28] sm:$0xff]  ;;  %v200_v25 = vld [vmem:[#allocation3 + $0x30] sm:$0xff]  ;;  %v201_v26 = vld [vmem:[#allocation3 + $0x38] sm:$0xff] }
  0xd1   :  { %v932_v24 = vpack.c.bf16 %v199_v23, %v198_v22  ;;  %v935_v27 = vpack.c.bf16 %v201_v26, %v200_v25  ;;  %v737_v32 = vld [vmem:[%s1625_s4] ss:$0 sm:$0xff]  ;;  %v401_v40 = vld [vmem:[%s1628_s7 + $0x8] sm:$0xff]  ;;  %v402_v41 = vld [vmem:[%s1628_s7 + $0x10] sm:$0xff] }
  0xd2   :  { %v202_v17 = vld [vmem:[%s1641_s16] sm:$0x3]  ;;  %v403_v43 = vld [vmem:[%s1628_s7 + $0x18] sm:$0xff]  ;;  %v405_v46 = vld [vmem:[%s1628_s7 + $0x28] sm:$0xff] }
  0xd3   :  { %918 = vmatpush3.bf16.msra.mxu1 %v917_v8  ;;  %v193_v28 = vld [vmem:[%s1642_s27] sm:$0x3]  ;;  %v941_v44 = vpack.c.bf16 %v403_v43, %v402_v41  ;;  %v406_v48 = vld [vmem:[%s1628_s7 + $0x30] sm:$0xff]  ;;  %v407_v49 = vld [vmem:[%s1628_s7 + $0x38] sm:$0xff] }
  0xd4   :  { %919 = vmatprep.subr.bf16.mxu1 %v1272_v1  ;;  %v400_v39 = vld [vmem:[%s1628_s7] sm:$0xff]  ;;  %v947_v50 = vpack.c.bf16 %v407_v49, %v406_v48  ;;  %v521_v12 = vld [vmem:[#allocation14 + $0x8] sm:$0xff]  ;;  %v524_v16 = vld [vmem:[#allocation14 + $0x20] sm:$0xff] }
  0xd5   :  { %v938_v42 = vpack.c.bf16 %v401_v40, %v400_v39  ;;  %v404_v45 = vld [vmem:[%s1628_s7 + $0x20] sm:$0xff]  ;;  %v609_v22 = vld [vmem:[#allocation17] sm:$0xff]  ;;  %v610_v23 = vld [vmem:[#allocation17 + $0x8] sm:$0xff] }
  0xd6   :  { %v944_v47 = vpack.c.bf16 %v405_v46, %v404_v45  ;;  %v738_v60 = vld [vmem:[#allocation7] ss:$0 sm:$0xff]  ;;  %v739_v62 = vld [vmem:[#allocation8] ss:$0 sm:$0xff]  ;;  %v740_v4 = vld [vmem:[#allocation10] ss:$0 sm:$0xff]  ;;  %v962_v25 = vpack.c.bf16 %v610_v23, %v609_v22 }
  0xd7   :  { %921 = vmatpush3.bf16.msra.mxu1 %v920_v11  ;;  %939 = vmatpush3.bf16.msra.mxu0 %v938_v42  ;;  %v520_v11 = vld [vmem:[#allocation14] sm:$0xff]  ;;  %v526_v19 = vld [vmem:[#allocation14 + $0x30] sm:$0xff]  ;;  %v527_v20 = vld [vmem:[#allocation14 + $0x38] sm:$0xff] }
  0xd8   :  { %922 = vmatprep.subr.bf16.mxu1 %v1272_v1  ;;  %940 = vmatprep.subr.bf16.mxu0 %v1272_v1  ;;  %v950_v13 = vpack.c.bf16 %v521_v12, %v520_v11  ;;  %v612_v26 = vld [vmem:[#allocation17 + $0x18] sm:$0xff]  ;;  %v621_v40 = vld [vmem:[#allocation17 + $0x60] sm:$0xff]  ;;  %v622_v41 = vld [vmem:[#allocation17 + $0x68] sm:$0xff] }
  0xd9   :  { %v980_v42 = vpack.c.bf16 %v622_v41, %v621_v40  ;;  %v748_v11 = vld [vmem:[#allocation2] ss:$0 sm:$0xff] }
  0xdb   :  { %924 = vmatpush3.bf16.msra.mxu1 %v923_v14  ;;  %942 = vmatpush3.bf16.msra.mxu0 %v941_v44  ;;  %v523_v14 = vld [vmem:[#allocation14 + $0x18] sm:$0xff] }
  0xdc   :  { %925 = vmatprep.subr.bf16.mxu1 %v1272_v1  ;;  %943 = vmatprep.subr.bf16.mxu0 %v1272_v1 }
  0xde   :  { %819 = vmatmul.mubr.msk.f32.vlgmr.msra.gmra.mrb[0].mxu1 %vm211_vm1, %v202_v17  ;;  %v525_v17 = vld [vmem:[#allocation14 + $0x28] sm:$0xff] }
  0xdf   :  { %927 = vmatpush3.bf16.msra.mxu1 %v926_v18  ;;  %837 = vmatprep.mubr.msk.f32.mxu1 %vm1273_vm0, %v1274_v2  ;;  %v956_v18 = vpack.c.bf16 %v525_v17, %v524_v16 }
  0xe0   :  { %928 = vmatprep.subr.bf16.mxu1 %v1272_v1  ;;  %945 = vmatpush3.bf16.msra.mxu0 %v944_v47 }
  0xe1   :  { %946 = vmatprep.subr.bf16.mxu0 %v1272_v1 }
  0xe3   :  { %930 = vmatpush3.bf16.msra.mxu1 %v929_v21  ;;  %v959_v21 = vpack.c.bf16 %v527_v20, %v526_v19 }
  0xe4   :  { %931 = vmatprep.subr.bf16.mxu1 %v1272_v1  ;;  %948 = vmatpush3.bf16.msra.mxu0 %v947_v50 }
  0xe5   :  { %961 = vmatprep.subr.bf16.mxu0 %v1272_v1 }
  0xe7   :  { %933 = vmatpush3.bf16.msra.mxu1 %v932_v24  ;;  %v611_v24 = vld [vmem:[#allocation17 + $0x10] sm:$0xff] }
  0xe8   :  { %934 = vmatprep.subr.bf16.mxu1 %v1272_v1 }
  0xeb   :  { %936 = vmatpush3.bf16.msra.mxu1 %v935_v27  ;;  %v965_v27 = vpack.c.bf16 %v612_v26, %v611_v24 }
  0xec   :  { %949 = vmatprep.subr.bf16.mxu1 %v1272_v1 }
  0xee   :  { %838 = vmatmul.mubr.msk.f32.vlgmr.msra.gmra.mrb[2].mxu1 %vm211_vm1, %v193_v28  ;;  %v613_v28 = vld [vmem:[#allocation17 + $0x20] sm:$0xff] }
  0xef   :  { %875 = vmatprep.mubr.msk.f32.mxu1 %vm1273_vm0, %v1274_v2  ;;  %951 = vmatpush3.bf16.msra.mxu1 %v950_v13 }
  0xf0   :  { %952 = vmatprep.subr.bf16.mxu1 %v1272_v1 }
 0x1b1   :  { %v281_v29 = vpop.f32.mrb[0].mxu1 }
 0x1b2   :  { %v820_v30 = vpop.f32.mrb[1].mxu1 }
 0x1c1   :  { %v354_v31 = vpop.f32.mrb[2].mxu1 }
 0x1c2   :  { %v355_v33 = vadd.f32 %v354_v31, %v281_v29  ;;  %v839_v34 = vpop.f32.mrb[3].mxu1  ;;  %v614_v29 = vld [vmem:[#allocation17 + $0x28] sm:$0xff]  ;;  %v615_v31 = vld [vmem:[#allocation17 + $0x30] sm:$0xff] }
 0x1c3   :  { %v968_v30 = vpack.c.bf16 %v614_v29, %v613_v28  ;;  %v617_v34 = vld [vmem:[#allocation17 + $0x40] sm:$0xff] }
 0x1c4   :  { %v365_v35 = vadd.f32 %v737_v32, %v355_v33  ;;  %v616_v32 = vld [vmem:[#allocation17 + $0x38] sm:$0xff] }
 0x1c5   :  { %v971_v33 = vpack.c.bf16 %v616_v32, %v615_v31 }
 0x1c6   :  { %v369_v36 = vsel %vm368_vm2, %v365_v35, 0.0  ;;  %v374_v37 = vmul.f32 %v365_v35, %v365_v35 }
 0x1c7   :  { %370 = vadd.xlane.f32.xlu0 %v369_v36 }
 0x1c8   :  { %v375_v38 = vsel %vm368_vm2, %v374_v37, 0.0  ;;  %v619_v37 = vld [vmem:[#allocation17 + $0x50] sm:$0xff] }
 0x1cb   :  { %376 = vadd.xlane.f32.xlu0 %v375_v38  ;;  %v620_v38 = vld [vmem:[#allocation17 + $0x58] sm:$0xff] }
 0x1cc   :  { %v977_v39 = vpack.c.bf16 %v620_v38, %v619_v37 }
 0x254   :  { %v371_v51 = vpop.xlane.xlu0 %370 }
 0x255   :  { %v373_v52 = vmul.f32 0.015625, %v371_v51 }
 0x257   :  { %v379_v54 = vmul.f32 %v373_v52, %v373_v52  ;;  %v381_v58 = vsub.f32 %v365_v35, %v373_v52  ;;  %v618_v35 = vld [vmem:[#allocation17 + $0x48] sm:$0xff]  ;;  %v742_v52 = vld [vmem:[#allocation11] ss:$0 sm:$0xff] }
 0x258   :  { %v377_v53 = vpop.xlane.xlu0 %376  ;;  %v974_v36 = vpack.c.bf16 %v618_v35, %v617_v34 }
 0x259   :  { %v378_v55 = vmul.f32 0.015625, %v377_v53 }
 0x25b   :  { %v380_v56 = vsub.f32 %v378_v55, %v379_v54  ;;  %v743_v54 = vld [vmem:[#allocation13] ss:$0 sm:$0xff] }
 0x25d   :  { %v382_v57 = vadd.f32 1e-05, %v380_v56 }
 0x25f   :  { %1001 = vrsqrt.f32 %v382_v57 }
 0x269   :  { %v1002_v59 = vpop.eup %1001 }
 0x26a   :  { %v384_v61 = vmul.f32 %v1002_v59, %v381_v58  ;;  %v624_v58 = vld [vmem:[#allocation17 + $0x78] sm:$0xff] }
 0x26c   :  { %v391_v63 = vmul.f32 %v738_v60, %v384_v61  ;;  %v744_v60 = vld [vmem:[#allocation16] ss:$0 sm:$0xff] }
 0x26e   :  { %v398_v0 = vadd.f32 %v739_v62, %v391_v63 }
 0x270   :  { %v399_v3 = vmax.f32 %v398_v0, 0.0 }
 0x272   :  { %857 = vmatmul.mubr.msk.f32.vlgmr.msra.gmra.mrb[0].mxu0 %vm211_vm1, %v399_v3  ;;  %v746_v3 = vld [vmem:[#allocation19] ss:$0 sm:$0xff] }
 0x273   :  { %910 = vmatprep.mubr.msk.f32.mxu0 %vm1273_vm0, %v1274_v2  ;;  %v522_v2 = vld [vmem:[#allocation14 + $0x10] sm:$0xff]  ;;  %963 = vmatpush3.bf16.msra.mxu0 %v962_v25 }
 0x274   :  { %v953_v15 = vpack.c.bf16 %v523_v14, %v522_v2  ;;  %964 = vmatprep.subr.bf16.mxu0 %v1272_v1 }
 0x276   :  { %954 = vmatpush3.bf16.msra.mxu1 %v953_v15 }
 0x277   :  { %955 = vmatprep.subr.bf16.mxu1 %v1272_v1  ;;  %966 = vmatpush3.bf16.msra.mxu0 %v965_v27 }
 0x278   :  { %967 = vmatprep.subr.bf16.mxu0 %v1272_v1 }
 0x27a   :  { %957 = vmatpush3.bf16.msra.mxu1 %v956_v18 }
 0x27b   :  { %958 = vmatprep.subr.bf16.mxu1 %v1272_v1  ;;  %969 = vmatpush3.bf16.msra.mxu0 %v968_v30 }
 0x27c   :  { %970 = vmatprep.subr.bf16.mxu0 %v1272_v1 }
 0x27e   :  { %960 = vmatpush3.bf16.msra.mxu1 %v959_v21 }
 0x27f   :  { %972 = vmatpush3.bf16.msra.mxu0 %v971_v33 }
 0x280   :  { %973 = vmatprep.subr.bf16.mxu0 %v1272_v1 }
 0x283   :  { %975 = vmatpush3.bf16.msra.mxu0 %v974_v36 }
 0x284   :  { %976 = vmatprep.subr.bf16.mxu0 %v1272_v1 }
 0x287   :  { %978 = vmatpush3.bf16.msra.mxu0 %v977_v39 }
 0x288   :  { %979 = vmatprep.subr.bf16.mxu0 %v1272_v1 }
 0x28b   :  { %981 = vmatpush3.bf16.msra.mxu0 %v980_v42 }
 0x28c   :  { %982 = vmatprep.subr.bf16.mxu0 %v1272_v1  ;;  %v623_v1 = vld [vmem:[#allocation17 + $0x70] sm:$0xff] }
 0x28d   :  { %v983_v59 = vpack.c.bf16 %v624_v58, %v623_v1 }
 0x28f   :  { %984 = vmatpush3.bf16.msra.mxu0 %v983_v59 }
 0x345   :  { %v484_v5 = vpop.f32.mrb[0].mxu0 }
 0x346   :  { %v1596_v6 = vadd.f32 %v740_v4, %v484_v5  ;;  %v858_v7 = vpop.f32.mrb[1].mxu0 }
 0x347   :  { %v747_v7 = vld [vmem:[%s1636_s15] ss:$0 sm:$0xff] }
 0x348   :  { %v490_v8 = vsel %vm368_vm2, %v1596_v6, 0.0  ;;  %v494_v9 = vmul.f32 %v1596_v6, %v1596_v6 }
 0x349   :  { %491 = vadd.xlane.f32.xlu1 %v490_v8 }
 0x34a   :  { %v495_v10 = vsel %vm368_vm2, %v494_v9, 0.0 }
 0x34d   :  { %496 = vadd.xlane.f32.xlu1 %v495_v10 }
 0x3d6   :  { %v492_v43 = vpop.xlane.xlu1 %491 }
 0x3d7   :  { %v493_v44 = vmul.f32 0.015625, %v492_v43 }
 0x3d9   :  { %v499_v46 = vmul.f32 %v493_v44, %v493_v44  ;;  %v501_v50 = vsub.f32 %v1596_v6, %v493_v44 }
 0x3da   :  { %v497_v45 = vpop.xlane.xlu1 %496 }
 0x3db   :  { %v498_v47 = vmul.f32 0.015625, %v497_v45 }
 0x3dd   :  { %v500_v48 = vsub.f32 %v498_v47, %v499_v46 }
 0x3df   :  { %v502_v49 = vadd.f32 1e-05, %v500_v48 }
 0x3e1   :  { %1003 = vrsqrt.f32 %v502_v49 }
 0x3eb   :  { %v1004_v51 = vpop.eup %1003 }
 0x3ec   :  { %v504_v53 = vmul.f32 %v1004_v51, %v501_v50 }
 0x3ee   :  { %v511_v55 = vmul.f32 %v742_v52, %v504_v53 }
 0x3f0   :  { %v518_v56 = vadd.f32 %v743_v54, %v511_v55 }
 0x3f2   :  { %v519_v57 = vmax.f32 %v518_v56, 0.0 }
 0x3f4   :  { %876 = vmatmul.mubr.msk.f32.vlgmr.msra.gmra.mrb[4].mxu1 %vm211_vm1, %v519_v57 }
 0x4c7   :  { %v604_v61 = vpop.f32.mrb[4].mxu1 }
 0x4c8   :  { %v605_v62 = vadd.f32 %v744_v60, %v604_v61  ;;  %v877_v63 = vpop.f32.mrb[5].mxu1 }
 0x4ca   :  { %v608_v0 = vmax.f32 %v605_v62, 0.0 }
 0x4cc   :  { %911 = vmatmul.mubr.f32.vlgmr.msra.gmra.mrb[2].mxu0 %v608_v0 }
 0x59f   :  { %v698_v4 = vpop.f32.mrb[2].mxu0 }
 0x5a0   :  { %v699_v5 = vadd.f32 %v746_v3, %v698_v4  ;;  %v912_v6 = vpop.f32.mrb[3].mxu0 }
 0x5a2   :  { %v702_v8 = vmax.f32 %v699_v5, 0.0 }
 0x5a4   :  { %v710_v9 = vmul.f32 %v747_v7, %v702_v8 }
 0x5a6   :  { %v712_v10 = vsel %vm711_vm3, %v710_v9, 0.0 }
 0x5a7   :  { %713 = vadd.xlane.f32.xlu0 %v712_v10 }
 0x634   :  { %v714_v12 = vpop.xlane.xlu0 %713 }
 0x635   :  { %v722_v13 = vadd.f32 %v748_v11, %v714_v12 }
 0x637   :  { %724 = vst.msk [vmem:[%s1638_s17] sm:$0x3] %vm723_vm4, %v722_v13 }
 0x638   :  { %729 = vsyncpa [#allocation4], 1 }
 0x639   :  { %730 = vsyncpa [#allocation6], 1 }
 0x63a   :  { %731 = vsyncpa [#allocation9], 1 }
 0x63b   :  { %732 = vsyncpa [#allocation12], 1 }
 0x63c   :  { %733 = vsyncpa [#allocation15], 1 }
 0x63d   :  { %734 = vsyncpa [#allocation18], 1 }

</bundles_post_ra>
